<compile_context>
chip_gen: v7x
topology: tpu7x:2x2x1
jax: 0.10.0
libtpu: 0.0.40
codegen_flags: <defaults>
</compile_context>

<pallas_src>
import jax
import jax.numpy as jnp
from jax.experimental import pallas as pl
from jax.experimental.pallas import tpu as pltpu

LANE = 128          # TPU lane width (last-dim vreg width)
SUBLANE = 8         # TPU sublane width
DEFAULT_TILE_B = 2048


def _round_up(a, m):
    return (a + m - 1) // m * m


def _dnn_kernel(x_ref, w1_ref, b1_ref, w2_ref, b2_ref, w3_ref, b3_ref, o_ref):
    # x_ref: (TILE_B, 784) bf16; weights bf16; biases f32; o_ref: (TILE_B, 128) f32.
    x = x_ref[...]

    # First hidden layer: Linear only (matches the PyTorch i==0 branch: no ReLU).
    h1 = jnp.dot(x, w1_ref[...], preferred_element_type=jnp.float32) + b1_ref[...]

    # Second hidden layer: Linear + ReLU (normalization_type == 'none').
    h2 = jnp.dot(h1.astype(jnp.bfloat16), w2_ref[...],
                 preferred_element_type=jnp.float32) + b2_ref[...]
    h2 = jnp.maximum(h2, 0.0)

    # Output layer: Linear only (logits). w3/b3 are zero-padded to 128 columns
    # so this store is lane-dense (unmasked vst).
    logits = jnp.dot(h2.astype(jnp.bfloat16), w3_ref[...],
                     preferred_element_type=jnp.float32) + b3_ref[...]
    o_ref[...] = logits.astype(o_ref.dtype)


def dnn_forward(x_nchw, params, *, tile_b=DEFAULT_TILE_B):
    """x_nchw: (B, 1, 28, 28) float32, NCHW like PyTorch. Returns (B, N_CLASSES) f32."""
    w1, b1, w2, b2, w3, b3 = params
    B = x_nchw.shape[0]
    in_dim = w1.shape[0]
    h1_dim = w1.shape[1]
    h2_dim = w2.shape[1]
    n_classes = w3.shape[1]

    # Equivalent of x.view(-1, 28*28*1); cast to bf16 (HBM traffic is x-dominated).
    x2d = x_nchw.reshape(B, in_dim).astype(jnp.bfloat16)

    # Lane-dense output: pad output columns (10) up to a multiple of 128 with zeros.
    n_out = _round_up(n_classes, LANE)
    w3p = jnp.zeros((h2_dim, n_out), jnp.float32).at[:, :n_classes].set(w3)
    b3p = jnp.zeros((1, n_out), jnp.float32).at[:, :n_classes].set(b3)

    # bf16 weights (MXU-native on v5e/v6e/v7x); biases stay f32.
    w1b = w1.astype(jnp.bfloat16)
    w2b = w2.astype(jnp.bfloat16)
    w3b = w3p.astype(jnp.bfloat16)
    b1f = b1.astype(jnp.float32)
    b2f = b2.astype(jnp.float32)
    b3f = b3p.astype(jnp.float32)

    # Choose batch tile: large (default 2048) to amortize per-step overhead, but
    # never larger than the (sublane-rounded) batch; pad B to a multiple of it.
    tb = min(tile_b, _round_up(B, SUBLANE))
    b_pad = _round_up(B, tb)
    if b_pad != B:
        x2d = jnp.pad(x2d, ((0, b_pad - B), (0, 0)))

    grid = (pl.cdiv(b_pad, tb),)

    # x / out tiled along batch; weights pinned VMEM-resident (same block every step).
    x_spec = pl.BlockSpec((tb, in_dim), lambda i: (i, 0))
    w1_spec = pl.BlockSpec((in_dim, h1_dim), lambda i: (0, 0))
    b1_spec = pl.BlockSpec((1, h1_dim), lambda i: (0, 0))
    w2_spec = pl.BlockSpec((h1_dim, h2_dim), lambda i: (0, 0))
    b2_spec = pl.BlockSpec((1, h2_dim), lambda i: (0, 0))
    w3_spec = pl.BlockSpec((h2_dim, n_out), lambda i: (0, 0))
    b3_spec = pl.BlockSpec((1, n_out), lambda i: (0, 0))
    out_spec = pl.BlockSpec((tb, n_out), lambda i: (i, 0))

    out = pl.pallas_call(
        _dnn_kernel,
        out_shape=jax.ShapeDtypeStruct((b_pad, n_out), jnp.float32),
        grid=grid,
        in_specs=[x_spec, w1_spec, b1_spec, w2_spec, b2_spec, w3_spec, b3_spec],
        out_specs=out_spec,
        compiler_params=pltpu.CompilerParams(
            dimension_semantics=("parallel",),       # megacore sharding on v7x
            vmem_limit_bytes=48 * 1024 * 1024,       # safe on v5e/v6e (128 MiB) and v7x (64 MiB)
        ),
    )(x2d, w1b, b1f, w2b, b2f, w3b, b3f)

    # Drop batch padding and the lane padding of the output columns.
    return out[:B, :n_classes]


def init_params(key, in_dim, hidden_widths, n_classes):
    """Deterministic init mimicking PyTorch Linear default:
    U(-1/sqrt(fan_in), 1/sqrt(fan_in)) for weight and bias.
    Weights stored as (in, out) — already transposed for x @ W."""
    dims = [in_dim] + list(hidden_widths) + [n_classes]
    params = []
    for i in range(len(dims) - 1):
        fan_in, fan_out = dims[i], dims[i + 1]
        key, kw, kb = jax.random.split(key, 3)
        bound = 1.0 / jnp.sqrt(jnp.float32(fan_in))
        w = jax.random.uniform(kw, (fan_in, fan_out), jnp.float32, -bound, bound)
        b = jax.random.uniform(kb, (1, fan_out), jnp.float32, -bound, bound)
        params.extend([w, b])
    return tuple(params)


def dnn_reference(x_nchw, params):
    """Pure-JAX f32 reference of the same forward pass."""
    w1, b1, w2, b2, w3, b3 = params
    x = x_nchw.reshape(x_nchw.shape[0], -1)
    h1 = x @ w1 + b1                      # no ReLU after first hidden layer
    h2 = jnp.maximum(h1 @ w2 + b2, 0.0)   # Linear + ReLU
    return h2 @ w3 + b3                   # output logits


if __name__ == "__main__":
    N_CLASSES = 10
    HIDDEN_LAYER_WIDTHS = [32, 32]
    IN_DIM = 28 * 28 * 1
    BATCH = 2

    key = jax.random.PRNGKey(0)
    key_x, key_x2, key_p = jax.random.split(key, 3)

    # PyTorch-style NCHW input: (B, C=1, H=28, W=28)
    x = jax.random.normal(key_x, (BATCH, 1, 28, 28), jnp.float32)
    params = init_params(key_p, IN_DIM, HIDDEN_LAYER_WIDTHS, N_CLASSES)

    out = dnn_forward(x, params)
    out = jax.block_until_ready(out)
    ref = dnn_reference(x, params)
    assert out.shape == (BATCH, N_CLASSES), out.shape
    # bf16 inputs/weights with f32 accumulation -> loosened tolerance vs f32 ref.
    assert jnp.allclose(out, ref, atol=3e-2, rtol=3e-2), "mismatch vs JAX reference"

    # Exercise multi-step batch grid + tail padding (B not divisible by TILE_B).
    B2 = 300
    x2 = jax.random.normal(key_x2, (B2, 1, 28, 28), jnp.float32)
    out2 = jax.block_until_ready(dnn_forward(x2, params, tile_b=128))
    ref2 = dnn_reference(x2, params)
    assert out2.shape == (B2, N_CLASSES), out2.shape
    assert jnp.allclose(out2, ref2, atol=3e-2, rtol=3e-2), "mismatch on tiled batch"

    print("KERNEL_OK")
</pallas_src>

<mosaic_0001>
module attributes {stable_mosaic.version = 11 : i64} {
  func.func @_dnn_kernel(%arg0: i32, %arg1: memref<8x784xbf16, #tpu.memory_space<vmem>>, %arg2: memref<784x32xbf16, #tpu.memory_space<vmem>>, %arg3: memref<1x32xf32, #tpu.memory_space<vmem>>, %arg4: memref<32x32xbf16, #tpu.memory_space<vmem>>, %arg5: memref<1x32xf32, #tpu.memory_space<vmem>>, %arg6: memref<32x128xbf16, #tpu.memory_space<vmem>>, %arg7: memref<1x128xf32, #tpu.memory_space<vmem>>, %arg8: memref<8x128xf32, #tpu.memory_space<vmem>>) attributes {dimension_semantics = [#tpu.dimension_semantics<parallel>], iteration_bounds = array<i64: 1>, scalar_prefetch = 0 : i64, scratch_operands = 0 : i64, tpu.core_type = #tpu.core_type<tc>, window_params = [{transform_indices = @transform_0, window_bounds = array<i64: 8, 784>}, {pipeline_mode = #tpu.pipeline_mode<synchronous>, transform_indices = @transform_1, window_bounds = array<i64: 784, 32>}, {pipeline_mode = #tpu.pipeline_mode<synchronous>, transform_indices = @transform_2, window_bounds = array<i64: 1, 32>}, {pipeline_mode = #tpu.pipeline_mode<synchronous>, transform_indices = @transform_3, window_bounds = array<i64: 32, 32>}, {pipeline_mode = #tpu.pipeline_mode<synchronous>, transform_indices = @transform_4, window_bounds = array<i64: 1, 32>}, {pipeline_mode = #tpu.pipeline_mode<synchronous>, transform_indices = @transform_5, window_bounds = array<i64: 32, 128>}, {pipeline_mode = #tpu.pipeline_mode<synchronous>, transform_indices = @transform_6, window_bounds = array<i64: 1, 128>}, {transform_indices = @transform_7, window_bounds = array<i64: 8, 128>}]} {
    %c0 = arith.constant 0 : index
    %c0_0 = arith.constant 0 : index
    %0 = vector.load %arg1[%c0, %c0_0] : memref<8x784xbf16, #tpu.memory_space<vmem>>, vector<8x784xbf16>
    %c0_1 = arith.constant 0 : index
    %c0_2 = arith.constant 0 : index
    %1 = vector.load %arg2[%c0_1, %c0_2] : memref<784x32xbf16, #tpu.memory_space<vmem>>, vector<784x32xbf16>
    %cst = arith.constant dense<0.000000e+00> : vector<8x32xf32>
    %2 = tpu.matmul %0, %1, %cst {dimension_numbers = #tpu.dot_dimension_numbers<[1], [0], [0], [1], [0, 0, 1, 1], [], []>} : vector<8x784xbf16>, vector<784x32xbf16>, vector<8x32xf32> -> vector<8x32xf32>
    %c0_3 = arith.constant 0 : index
    %c0_4 = arith.constant 0 : index
    %3 = vector.load %arg3[%c0_3, %c0_4] : memref<1x32xf32, #tpu.memory_space<vmem>>, vector<1x32xf32>
    %4 = vector.broadcast %3 : vector<1x32xf32> to vector<8x32xf32>
    %5 = arith.addf %2, %4 : vector<8x32xf32>
    %6 = arith.truncf %5 : vector<8x32xf32> to vector<8x32xbf16>
    %c0_5 = arith.constant 0 : index
    %c0_6 = arith.constant 0 : index
    %7 = vector.load %arg4[%c0_5, %c0_6] : memref<32x32xbf16, #tpu.memory_space<vmem>>, vector<32x32xbf16>
    %cst_7 = arith.constant dense<0.000000e+00> : vector<8x32xf32>
    %8 = tpu.matmul %6, %7, %cst_7 {dimension_numbers = #tpu.dot_dimension_numbers<[1], [0], [0], [1], [0, 0, 1, 1], [], []>} : vector<8x32xbf16>, vector<32x32xbf16>, vector<8x32xf32> -> vector<8x32xf32>
    %c0_8 = arith.constant 0 : index
    %c0_9 = arith.constant 0 : index
    %9 = vector.load %arg5[%c0_8, %c0_9] : memref<1x32xf32, #tpu.memory_space<vmem>>, vector<1x32xf32>
    %10 = vector.broadcast %9 : vector<1x32xf32> to vector<8x32xf32>
    %11 = arith.addf %8, %10 : vector<8x32xf32>
    %cst_10 = arith.constant 0.000000e+00 : f32
    %12 = vector.broadcast %cst_10 : f32 to vector<8x32xf32>
    %13 = arith.maximumf %11, %12 : vector<8x32xf32>
    %14 = arith.truncf %13 : vector<8x32xf32> to vector<8x32xbf16>
    %c0_11 = arith.constant 0 : index
    %c0_12 = arith.constant 0 : index
    %15 = vector.load %arg6[%c0_11, %c0_12] : memref<32x128xbf16, #tpu.memory_space<vmem>>, vector<32x128xbf16>
    %cst_13 = arith.constant dense<0.000000e+00> : vector<8x128xf32>
    %16 = tpu.matmul %14, %15, %cst_13 {dimension_numbers = #tpu.dot_dimension_numbers<[1], [0], [0], [1], [0, 0, 1, 1], [], []>} : vector<8x32xbf16>, vector<32x128xbf16>, vector<8x128xf32> -> vector<8x128xf32>
    %c0_14 = arith.constant 0 : index
    %c0_15 = arith.constant 0 : index
    %17 = vector.load %arg7[%c0_14, %c0_15] : memref<1x128xf32, #tpu.memory_space<vmem>>, vector<1x128xf32>
    %18 = vector.broadcast %17 : vector<1x128xf32> to vector<8x128xf32>
    %19 = arith.addf %16, %18 : vector<8x128xf32>
    %c0_16 = arith.constant 0 : index
    %c0_17 = arith.constant 0 : index
    %20 = vector.load %arg8[%c0_16, %c0_17] : memref<8x128xf32, #tpu.memory_space<vmem>>, vector<8x128xf32>
    tpu.vector_store %arg8[%c0_16, %c0_17], %19 {strides = array<i32>} : memref<8x128xf32, #tpu.memory_space<vmem>>, vector<8x128xf32>,
    return
  }
  func.func @transform_0(%arg0: i32) -> (i32, i32) {
    %c0_i32 = arith.constant 0 : i32
    %c0_i32_0 = arith.constant 0 : i32
    return %arg0, %c0_i32 : i32, i32
  }
  func.func @transform_1(%arg0: i32) -> (i32, i32) {
    %c0_i32 = arith.constant 0 : i32
    %c0_i32_0 = arith.constant 0 : i32
    %c0_i32_1 = arith.constant 0 : i32
    return %c0_i32, %c0_i32_0 : i32, i32
  }
  func.func @transform_2(%arg0: i32) -> (i32, i32) {
    %c0_i32 = arith.constant 0 : i32
    %c0_i32_0 = arith.constant 0 : i32
    %c0_i32_1 = arith.constant 0 : i32
    return %c0_i32, %c0_i32_0 : i32, i32
  }
  func.func @transform_3(%arg0: i32) -> (i32, i32) {
    %c0_i32 = arith.constant 0 : i32
    %c0_i32_0 = arith.constant 0 : i32
    %c0_i32_1 = arith.constant 0 : i32
    return %c0_i32, %c0_i32_0 : i32, i32
  }
  func.func @transform_4(%arg0: i32) -> (i32, i32) {
    %c0_i32 = arith.constant 0 : i32
    %c0_i32_0 = arith.constant 0 : i32
    %c0_i32_1 = arith.constant 0 : i32
    return %c0_i32, %c0_i32_0 : i32, i32
  }
  func.func @transform_5(%arg0: i32) -> (i32, i32) {
    %c0_i32 = arith.constant 0 : i32
    %c0_i32_0 = arith.constant 0 : i32
    %c0_i32_1 = arith.constant 0 : i32
    return %c0_i32, %c0_i32_0 : i32, i32
  }
  func.func @transform_6(%arg0: i32) -> (i32, i32) {
    %c0_i32 = arith.constant 0 : i32
    %c0_i32_0 = arith.constant 0 : i32
    %c0_i32_1 = arith.constant 0 : i32
    return %c0_i32, %c0_i32_0 : i32, i32
  }
  func.func @transform_7(%arg0: i32) -> (i32, i32) {
    %c0_i32 = arith.constant 0 : i32
    %c0_i32_0 = arith.constant 0 : i32
    return %arg0, %c0_i32 : i32, i32
  }
}

</mosaic_0001>

<bundles_post_ra>
// kernel: tpu_custom_call.1
= control target key start
LH: loop header
LB: loop body
LE: loop exit
PB: predicated region body
PF: predicated region fallthrough
CT: control target
= control target key end

     0   :  { %v1019_v43 = vmov 0.0   ;;  %vm1020_vm0 = vmmov 0   ;;  %vm455_vm1 = vcmask 130048   ;;  %s1267_s0 = inlined_call_operand.vmem [shape: bf16[8,784], index: 0, kind: input, shape index: {}]   ;;  %s1268_s1 = inlined_call_operand.vmem [shape: bf16[784,32], index: 1, kind: input, shape index: {}]   ;;  %s1269_s2 = inlined_call_operand.vmem [shape: f32[1,32], index: 2, kind: input, shape index: {}]   ;;  %s1270_s3 = inlined_call_operand.vmem [shape: bf16[32,32], index: 3, kind: input, shape index: {}]   ;;  %s1271_s4 = inlined_call_operand.vmem [shape: f32[1,32], index: 4, kind: input, shape index: {}]   ;;  %s1272_s5 = inlined_call_operand.vmem [shape: bf16[32,128], index: 5, kind: input, shape index: {}]   ;;  %s1273_s6 = inlined_call_operand.vmem [shape: f32[1,128], index: 6, kind: input, shape index: {}]   ;;  %s1274_s7 = inlined_call_operand.hbm [shape: f32[8,128], index: 7, kind: output, shape index: {}]  }
   0x1   :  { %v935_v0 = vld [vmem:[%s1268_s1 + $0x40] sm:$0xff]   ;;  %v939_v4 = vld [vmem:[%s1268_s1 + $0x48] sm:$0xff]   ;;  %v943_v8 = vld [vmem:[%s1268_s1 + $0x50] sm:$0xff]  }
   0x2   :  { %v936_v1 = vld [vmem:[%s1268_s1] sm:$0xff]   ;;  %836 = vmatprep.subr.bf16.mxu0 %v935_v0  ;;  %v940_v5 = vld [vmem:[%s1268_s1 + $0x8] sm:$0xff]   ;;  %v944_v9 = vld [vmem:[%s1268_s1 + $0x10] sm:$0xff]  }
   0x3   :  { %v937_v2 = vld [vmem:[%s1268_s1 + $0xc0] sm:$0xff]   ;;  %837 = vmatpush3.bf16.msra.mxu0 %v936_v1  ;;  %v941_v6 = vld [vmem:[%s1268_s1 + $0xc8] sm:$0xff]   ;;  %v945_v10 = vld [vmem:[%s1268_s1 + $0xd0] sm:$0xff]  }
   0x4   :  { %v938_v3 = vld [vmem:[%s1268_s1 + $0x80] sm:$0xff]   ;;  %858 = vmatprep.subr.bf16.mxu1 %v937_v2  ;;  %838 = vmatprep.subr.bf16.mxu0 %v939_v4  ;;  %v942_v7 = vld [vmem:[%s1268_s1 + $0x88] sm:$0xff]   ;;  %v946_v11 = vld [vmem:[%s1268_s1 + $0x90] sm:$0xff]  }
   0x5   :  { %859 = vmatpush3.bf16.msra.mxu1 %v938_v3  ;;  %v947_v12 = vld [vmem:[%s1268_s1 + $0x58] sm:$0xff]   ;;  %v951_v16 = vld [vmem:[%s1268_s1 + $0x60] sm:$0xff]   ;;  %v955_v20 = vld [vmem:[%s1268_s1 + $0x68] sm:$0xff]  }
   0x6   :  { %860 = vmatprep.subr.bf16.mxu1 %v941_v6  ;;  %v948_v13 = vld [vmem:[%s1268_s1 + $0x18] sm:$0xff]   ;;  %v952_v17 = vld [vmem:[%s1268_s1 + $0x20] sm:$0xff]   ;;  %v956_v21 = vld [vmem:[%s1268_s1 + $0x28] sm:$0xff]  }
   0x7   :  { %839 = vmatpush3.bf16.msra.mxu0 %v940_v5  ;;  %v949_v14 = vld [vmem:[%s1268_s1 + $0xd8] sm:$0xff]   ;;  %v953_v18 = vld [vmem:[%s1268_s1 + $0xe0] sm:$0xff]   ;;  %v957_v22 = vld [vmem:[%s1268_s1 + $0xe8] sm:$0xff]  }
   0x8   :  { %840 = vmatprep.subr.bf16.mxu0 %v943_v8  ;;  %v950_v15 = vld [vmem:[%s1268_s1 + $0x98] sm:$0xff]   ;;  %v954_v19 = vld [vmem:[%s1268_s1 + $0xa0] sm:$0xff]   ;;  %v958_v23 = vld [vmem:[%s1268_s1 + $0xa8] sm:$0xff]  }
   0x9   :  { %861 = vmatpush3.bf16.msra.mxu1 %v942_v7  ;;  %v959_v24 = vld [vmem:[%s1268_s1 + $0x70] sm:$0xff]   ;;  %v963_v28 = vld [vmem:[%s1268_s1 + $0x78] sm:$0xff]   ;;  %v28_v31 = vld [vmem:[%s1267_s0] sm:$0xff] }
   0xa   :  { %862 = vmatprep.subr.bf16.mxu1 %v945_v10  ;;  %v960_v25 = vld [vmem:[%s1268_s1 + $0x30] sm:$0xff]   ;;  %v964_v29 = vld [vmem:[%s1268_s1 + $0x38] sm:$0xff]   ;;  %v771_v32 = vcombine.low %v28_v31, %v28_v31  ;;  %v772_v33 = vcombine.high %v28_v31, %v28_v31  ;;  %v969_v35 = vld [vmem:[%s1268_s1 + $0x140] sm:$0xff]  }
   0xb   :  { %841 = vmatpush3.bf16.msra.mxu0 %v944_v9  ;;  %v961_v26 = vld [vmem:[%s1268_s1 + $0xf0] sm:$0xff]   ;;  %v965_v30 = vld [vmem:[%s1268_s1 + $0xf8] sm:$0xff]   ;;  %v29_v36 = vld [vmem:[%s1267_s0 + $0x8] sm:$0xff] }
   0xc   :  { %842 = vmatprep.subr.bf16.mxu0 %v947_v12  ;;  %v962_v27 = vld [vmem:[%s1268_s1 + $0xb0] sm:$0xff]   ;;  %v968_v34 = vld [vmem:[%s1268_s1 + $0xb8] sm:$0xff]   ;;  %491 = vmatprep.mubr.bf16.mxu0 %v772_v33  ;;  %v773_v37 = vcombine.low %v29_v36, %v29_v36  ;;  %v774_v38 = vcombine.high %v29_v36, %v29_v36  ;;  %v972_v39 = vld [vmem:[%s1268_s1 + $0x100] sm:$0xff]  }
   0xd   :  { %863 = vmatpush3.bf16.msra.mxu1 %v946_v11  ;;  %v973_v40 = vld [vmem:[%s1268_s1 + $0x148] sm:$0xff]   ;;  %v975_v42 = vld [vmem:[%s1268_s1 + $0x150] sm:$0xff]   ;;  %v977_v45 = vld [vmem:[%s1268_s1 + $0x158] sm:$0xff]  }
   0xe   :  { %864 = vmatprep.subr.bf16.mxu1 %v949_v14  ;;  %531 = vmatprep.mubr.bf16.mxu1 %v774_v38  ;;  %v974_v41 = vld [vmem:[%s1268_s1 + $0x108] sm:$0xff]   ;;  %v976_v44 = vld [vmem:[%s1268_s1 + $0x110] sm:$0xff]   ;;  %v978_v46 = vld [vmem:[%s1268_s1 + $0x118] sm:$0xff]  }
   0xf   :  { %843 = vmatpush3.bf16.msra.mxu0 %v948_v13  ;;  %v979_v47 = vld [vmem:[%s1268_s1 + $0x160] sm:$0xff]   ;;  %v981_v49 = vld [vmem:[%s1268_s1 + $0x168] sm:$0xff]   ;;  %v30_v51 = vld [vmem:[%s1267_s0 + $0x10] sm:$0xff] }
  0x10   :  { %844 = vmatprep.subr.bf16.mxu0 %v951_v16  ;;  %v980_v48 = vld [vmem:[%s1268_s1 + $0x120] sm:$0xff]   ;;  %v982_v52 = vld [vmem:[%s1268_s1 + $0x128] sm:$0xff]   ;;  %v776_v53 = vcombine.high %v30_v51, %v30_v51  ;;  %v990_v54 = vld [vmem:[%s1267_s0 + $0x18] ss:$0 sps:$4 sm:$0xff]  }
  0x11   :  { %865 = vmatpush3.bf16.msra.mxu1 %v950_v15  ;;  %v987_v50 = vld [vmem:[%s1268_s1 + $0x180] sm:$0xff]   ;;  %v983_v55 = vld [vmem:[%s1268_s1 + $0x170] sm:$0xff]  }
  0x12   :  { %866 = vmatprep.subr.bf16.mxu1 %v953_v18 }
  0x13   :  { %845 = vmatpush3.bf16.msra.mxu0 %v952_v17 }
  0x14   :  { %846 = vmatprep.subr.bf16.mxu0 %v955_v20 }
  0x15   :  { %867 = vmatpush3.bf16.msra.mxu1 %v954_v19 }
  0x16   :  { %868 = vmatprep.subr.bf16.mxu1 %v957_v22 }
  0x17   :  { %847 = vmatpush3.bf16.msra.mxu0 %v956_v21 }
  0x18   :  { %848 = vmatprep.subr.bf16.mxu0 %v959_v24 }
  0x19   :  { %869 = vmatpush3.bf16.msra.mxu1 %v958_v23 }
  0x1a   :  { %870 = vmatprep.subr.bf16.mxu1 %v961_v26 }
  0x1b   :  { %849 = vmatpush3.bf16.msra.mxu0 %v960_v25 }
  0x1c   :  { %850 = vmatprep.subr.bf16.mxu0 %v963_v28 }
  0x1d   :  { %871 = vmatpush3.bf16.msra.mxu1 %v962_v27 }
  0x1e   :  { %872 = vmatprep.subr.bf16.mxu1 %v965_v30 }
  0x1f   :  { %851 = vmatpush3.bf16.msra.mxu0 %v964_v29 }
  0x20   :  { %880 = vmatprep.subr.bf16.mxu0 %v969_v35 }
  0x21   :  { %873 = vmatpush3.bf16.msra.mxu1 %v968_v34 }
  0x22   :  { %492 = vmatmul.mubr.bf16.vlgmr.msra.gmra.mrb[0].mxu0 %v771_v32  ;;  %910 = vmatprep.subr.bf16.mxu1 %v1019_v43 }
  0x23   :  { %881 = vmatpush3.bf16.msra.mxu0 %v972_v39  ;;  %571 = vmatprep.mubr.bf16.mxu0 %v776_v53 }
  0x24   :  { %532 = vmatmul.mubr.bf16.vlgmr.msra.gmra.mrb[0].mxu1 %v773_v37  ;;  %882 = vmatprep.subr.bf16.mxu0 %v973_v40 }
  0x25   :  { %912 = vmatprep.mubr.msk.bf16.mxu1 %vm1020_vm0, %v1019_v43  ;;  %911 = vmatpush3.bf16.msra.mxu1 %v987_v50 }
  0x26   :  { %916 = vmatprep.subr.bf16.mxu1 %v1019_v43 }
  0x27   :  { %883 = vmatpush3.bf16.msra.mxu0 %v974_v41 }
  0x28   :  { %884 = vmatprep.subr.bf16.mxu0 %v975_v42 }
  0x2b   :  { %885 = vmatpush3.bf16.msra.mxu0 %v976_v44 }
  0x2c   :  { %886 = vmatprep.subr.bf16.mxu0 %v977_v45 }
  0x2f   :  { %887 = vmatpush3.bf16.msra.mxu0 %v978_v46 }
  0x30   :  { %888 = vmatprep.subr.bf16.mxu0 %v979_v47 }
  0x33   :  { %889 = vmatpush3.bf16.msra.mxu0 %v980_v48 }
  0x34   :  { %890 = vmatprep.subr.bf16.mxu0 %v981_v49 }
  0x35   :  { %12 = vsyncpa [#allocation3], 0  ;;  %913 = vmatmul.mubr.msk.bf16.vlgmr.msra.gmra.mrb[4].mxu1 %vm455_vm1, %v990_v54  ;;  %v984_v56 = vld [vmem:[%s1268_s1 + $0x130] sm:$0xff]   ;;  %v985_v57 = vld [vmem:[%s1268_s1 + $0x178] sm:$0xff]   ;;  %v775_v59 = vcombine.low %v30_v51, %v30_v51  ;;  %vm643_vm2 = vcmask 261120   ;;  %s1021_s25 = smov [#allocation2]  }
  0x36   :  { %920 = vmatprep.mubr.msk.bf16.mxu1 %vm1020_vm0, %v1019_v43  ;;  %v986_v58 = vld [vmem:[%s1268_s1 + $0x138] sm:$0xff]   ;;  %v991_v60 = vld [vmem:[%s1270_s3] sm:$0xff]   ;;  %v992_v61 = vld [vmem:[%s1270_s3 + $0x8] sm:$0xff]  }
  0x37   :  { %891 = vmatpush3.bf16.msra.mxu0 %v982_v52  ;;  %917 = vmatpush3.bf16.msra.mxu1 %v991_v60  ;;  %v770_v63 = vld [vmem:[%s1269_s2] ss:$0 sm:$0xff]  ;;  %v994_v24 = vld [vmem:[%s1272_s5 + $0x8] sm:$0xff]  }
  0x38   :  { %892 = vmatprep.subr.bf16.mxu0 %v983_v55  ;;  %918 = vmatprep.subr.bf16.mxu1 %v1019_v43  ;;  %v993_v22 = vld [vmem:[%s1272_s5] sm:$0xff]   ;;  %s762_s5 = sshll.u32 %s1021_s25, 4  ;;  %s763_s5 = int_to_ptr.vmem [resolvable:$true] %s762_s5 }
  0x39   :  { %v828_v25 = vld [vmem:[%s1271_s4] ss:$0 sm:$0xff]  ;;  %s995_s4 = scalar_lea.vmem %s763_s5, 128  ;;  %p1000_p1 = scmp.lt.s32.totalorder %s763_s5, %s763_s5 }
  0x3a   :  { %v832_v33 = vld [vmem:[%s1273_s6] ss:$0 sm:$0xff]  ;;  %p996_p0 = scmp.ne.s32.totalorder %s763_s5, %s995_s4  ;;  %p1001_p2 = scmp.lt.s32.totalorder %s995_s4, %s995_s4 }
  0x3b   :  { %893 = vmatpush3.bf16.msra.mxu0 %v984_v56  ;;  %919 = vmatpush3.bf16.msra.mxu1 %v992_v61 }
  0x3c   :  { %894 = vmatprep.subr.bf16.mxu0 %v985_v57  ;;  %924 = vmatprep.subr.bf16.mxu1 %v1019_v43  ;;  %p1002_p3 = por %p1001_p2, %p1000_p1 }
  0x3e   :  { %p1003_p4 = pnand %p1002_p3, %p996_p0 }
  0x3f   :  { %895 = vmatpush3.bf16.msra.mxu0 %v986_v58 }
  0x42   :  { %572 = vmatmul.mubr.bf16.vlgmr.msra.gmra.mrb[4].mxu0 %v775_v59 }
  0xf5   :  { %v852_v62 = vpop.f32.mrb[0].mxu0 }
  0xf6   :  { %v853_v0 = vpop.f32.mrb[1].mxu0 }
  0xf7   :  { %v854_v1 = vadd.f32 %v853_v0, %v852_v62  ;;  %v855_v2 = vpop.f32.mrb[2].mxu0  ;;  %v874_v3 = vpop.f32.mrb[0].mxu1 }
  0xf8   :  { %v856_v4 = vpop.f32.mrb[3].mxu0  ;;  %v875_v5 = vpop.f32.mrb[1].mxu1 }
  0xf9   :  { %v494_v6 = vadd.f32 %v854_v1, %v770_v63  ;;  %v876_v7 = vadd.f32 %v875_v5, %v874_v3  ;;  %v877_v8 = vpop.f32.mrb[2].mxu1 }
  0xfa   :  { %v878_v9 = vpop.f32.mrb[3].mxu1 }
  0xfb   :  { %v534_v10 = vadd.f32 %v876_v7, %v494_v6 }
 0x108   :  { %v613_v11 = vpop.f32.mrb[4].mxu1 }
 0x109   :  { %v914_v12 = vpop.f32.mrb[5].mxu1 }
 0x10a   :  { %v616_v13 = vpop.f32.mrb[6].mxu1 }
 0x10b   :  { %v915_v14 = vpop.f32.mrb[7].mxu1 }
 0x115   :  { %v896_v15 = vpop.f32.mrb[4].mxu0 }
 0x116   :  { %v897_v16 = vpop.f32.mrb[5].mxu0 }
 0x117   :  { %v898_v17 = vadd.f32 %v897_v16, %v896_v15  ;;  %v899_v18 = vpop.f32.mrb[6].mxu0 }
 0x118   :  { %v900_v19 = vpop.f32.mrb[7].mxu0 }
 0x119   :  { %v574_v20 = vadd.f32 %v898_v17, %v534_v10 }
 0x11b   :  { %v614_v21 = vadd.f32 %v613_v11, %v574_v20 }
 0x11d   :  { %v619_v23 = vpack.c.bf16 %v614_v21, %v614_v21 }
 0x11f   :  { %921 = vmatmul.mubr.msk.bf16.vlgmr.msra.gmra.mrb[8].mxu1 %vm643_vm2, %v619_v23 }
 0x120   :  { %925 = vmatpush3.bf16.msra.mxu1 %v993_v22  ;;  %928 = vmatprep.mubr.msk.bf16.mxu1 %vm1020_vm0, %v1019_v43 }
 0x121   :  { %926 = vmatprep.subr.bf16.mxu1 %v1019_v43 }
 0x124   :  { %927 = vmatpush3.bf16.msra.mxu1 %v994_v24 }
 0x1f2   :  { %v681_v26 = vpop.f32.mrb[8].mxu1 }
 0x1f3   :  { %v682_v27 = vadd.f32 %v828_v25, %v681_v26  ;;  %v922_v28 = vpop.f32.mrb[9].mxu1 }
 0x1f4   :  { %v684_v29 = vpop.f32.mrb[10].mxu1 }
 0x1f5   :  { %v687_v30 = vmax.f32 %v682_v27, 0.0  ;;  %v923_v31 = vpop.f32.mrb[11].mxu1 }
 0x1f7   :  { %v688_v32 = vpack.c.bf16 %v687_v30, %v687_v30 }
 0x1f9   :  { %929 = vmatmul.mubr.msk.bf16.vlgmr.msra.gmra.mrb[12].mxu1 %vm643_vm2, %v688_v32 }
 0x2cc   :  { %v749_v34 = vpop.f32.mrb[12].mxu1 }
 0x2cd   :  { %v750_v35 = vadd.f32 %v832_v33, %v749_v34  ;;  %v930_v36 = vpop.f32.mrb[13].mxu1 }
 0x2ce   :  { %v752_v37 = vpop.f32.mrb[14].mxu1 }
 0x2cf   :  { %755 = vst [vmem:[#allocation2] sm:$0xff] %v750_v35  ;;  %v931_v38 = vpop.f32.mrb[15].mxu1 }
 0x2d0   :  { %1006 = shalt.err (!%p1003_p4)
}
 0x2d1   :  { %s1007_s6 = scalar_lea.hbm %s1274_s7, 128 }
 0x2d2   :  { %p1008_p5 = scmp.ne.s32.totalorder %s1274_s7, %s1007_s6  ;;  %p1011_p6 = scmp.lt.u32.totalorder %s1007_s6, %s1274_s7 }
 0x2d4   :  { %p1013_p7 = pnand %p1011_p6, %p1008_p5 }
 0x2d6   :  { %1016 = shalt.err (!%p1013_p7)
}
 0x2d7   :  { %765 = dma.vmem_to_hbm [thread:$0]  %s763_s5, 128, %s1274_s7, [#allocation3]  }
 0x2d8   :  { %1017 = dma.done.wait [#allocation3], 128  }
 0x2d9   :  { %1018 = vsyncadd [#allocation3], 4294967168 }
 0x2da   :  { %769 = vsyncpa [#allocation3], 1 }

</bundles_post_ra>
